<compile_context>
chip_gen: v7x
topology: tpu7x:2x2x1
jax: 0.10.0
libtpu: 0.0.40
codegen_flags: <defaults>
</compile_context>

<pallas_src>
import functools

import jax
import jax.numpy as jnp
from jax import lax
from jax.experimental import pallas as pl
from jax.experimental.pallas import tpu as pltpu

N_KERNELS = 40      # conv output channels
N_CHANNELS = 22     # EEG channels
EMB_SIZE = 40
KW = 25             # temporal conv width
POOL_K = 75         # avg-pool window (time)
POOL_S = 15         # avg-pool stride (time)
BN_EPS = 1e-5

# Tap packing: 25 taps -> 3 groups whose in-kernel row shifts are multiples of the f32
# sublane tile (8), so the post-matmul shifted adds are plain aligned value slices.
GROUP_STARTS = (0, 8, 16)                     # row shift applied to each group's product
GROUP_BOUNDS = ((0, 9), (9, 17), (17, 25))    # taps owned by each group
G_WIN = 9                                     # packed window width (taps)
NG = len(GROUP_STARTS)
K_PACK = G_WIN * N_CHANNELS                   # 198 packed channels
K_LANES = 256                                 # lane-padded contracting dim
SHIFT_TAIL = GROUP_STARTS[-1]                 # merged rows dropped at the block tail


def _patch_embed_kernel(x_ref, w_ref, b_ref, pp_ref, wp_ref, bp_ref, o_ref, *, m_out):
    """One batch block per grid step.

    x_ref : (b_blk*T_pad, 256) bf16  tap-packed input, batch merged into the row dim
    w_ref : (3, 256, NK)       bf16  packed fused conv1*conv2*BN weight
    b_ref : (1, NK)            f32   fused bias
    pp_ref: (b_blk*n_pool, m_out) bf16  block-diagonal 0/1 avg-pool / row-select matrix
    wp_ref: (NK, E)            f32   1x1 projection weight (1/POOL_K folded in)
    bp_ref: (1, E)             f32   projection bias
    o_ref : (b_blk, n_pool, E) f32
    """
    x = x_ref[...]

    # Fused conv1+conv2+BN: three merged-M MXU matmuls (M = b_blk*T_pad, K = 256, N = 40),
    # then sublane-aligned shifted adds realize the tap-group offsets {0, 8, 16}.
    p0 = jnp.dot(x, w_ref[0], preferred_element_type=jnp.float32)
    p1 = jnp.dot(x, w_ref[1], preferred_element_type=jnp.float32)
    p2 = jnp.dot(x, w_ref[2], preferred_element_type=jnp.float32)
    y = p0[0:m_out, :] + p1[8:8 + m_out, :] + p2[16:16 + m_out, :] + b_ref[...]

    # ELU (alpha = 1); clamp keeps exp safe on the (masked-out) positive branch.
    y = jnp.where(y > 0.0, y, jnp.exp(jnp.minimum(y, 0.0)) - 1.0)

    # AvgPool2d((1,75),(1,15)) + valid-row selection as ONE block-diagonal matmul.
    # pp has 0/1 entries (exact in bf16); the 1/75 scale is folded into wp.
    pooled = jnp.dot(pp_ref[...], y.astype(pp_ref.dtype),
                     preferred_element_type=jnp.float32)          # (b_blk*n_pool, NK)

    # Dropout(0.5): identity at inference.
    # Projection Conv2d(NK, EMB, (1,1)) == dense over channels (tiny; kept f32).
    out = jnp.dot(pooled, wp_ref[...], preferred_element_type=jnp.float32) + bp_ref[...]

    b_blk, n_pool, emb = o_ref.shape
    o_ref[...] = out.reshape(b_blk, n_pool, emb).astype(o_ref.dtype)  # one store / step


def _round_up(v, m):
    return (v + m - 1) // m * m


def _pick_batch_block(batch, t_pad, *, cap=8, vmem_budget=12 << 20):
    """Largest divisor of `batch` that keeps >= 2 grid steps (v7x megacore) and keeps the
    per-step working set (double-buffered x block + three f32 products) within budget."""
    best = 1
    for bb in range(1, min(batch, cap) + 1):
        if batch % bb:
            continue
        if batch >= 2 and batch // bb < 2:
            continue
        rows = bb * t_pad
        work = 2 * rows * K_LANES * 2 + NG * rows * 128 * 4
        if work > vmem_budget:
            continue
        best = bb
    return best


def _fold_and_pack_weights(params, mxu_dtype):
    w1, b1, w2, b2, gamma, beta, rmean, rvar, wp, bp = params
    # Fold conv1 + conv2 + BatchNorm (running stats) into one (KW, C, NK) weight (f32).
    w_fold = jnp.einsum('okc,kj->jco', w2, w1)                       # (KW, C, NK)
    b_fold = jnp.einsum('okc,k->o', w2, b1) + b2                     # (NK,)
    scale = gamma * lax.rsqrt(rvar + BN_EPS)
    w_fused = w_fold * scale[None, None, :]
    b_fused = ((b_fold - rmean) * scale + beta).reshape(1, N_KERNELS).astype(jnp.float32)

    # Pack the 25 taps into 3 lane-dense groups (windows [0,9), [8,17), [16,25)).
    zeros = jnp.zeros_like(w_fused[0])
    blocks = []
    for start, (lo, hi) in zip(GROUP_STARTS, GROUP_BOUNDS):
        cols = [w_fused[start + g] if lo <= start + g < hi else zeros
                for g in range(G_WIN)]
        blocks.append(jnp.concatenate(cols, axis=0))                 # (G_WIN*C, NK)
    w_pk = jnp.stack(blocks)                                         # (NG, K_PACK, NK)
    w_pk = jnp.pad(w_pk, ((0, 0), (0, K_LANES - K_PACK), (0, 0))).astype(mxu_dtype)

    # 1x1 projection; fold the avg-pool 1/POOL_K in (the pooling matrix is 0/1).
    wpe = (wp.T / POOL_K).astype(jnp.float32)                        # (NK, E)
    bpe = bp.reshape(1, -1).astype(jnp.float32)
    return w_pk, b_fused, wpe, bpe


def _pack_input(x_bct, t_pad, mxu_dtype):
    """(B, C, T) -> (B*T_pad, 256): time (merged with batch) on sublanes, a 9-tap by
    22-channel window on lanes (partial im2col), zero-padded rows/lanes."""
    B, _, T = x_bct.shape
    x_btc = jnp.transpose(x_bct, (0, 2, 1))                          # (B, T, C)
    shifts = [jnp.pad(x_btc[:, g:, :], ((0, 0), (0, g), (0, 0))) for g in range(G_WIN)]
    x_pk = jnp.concatenate(shifts, axis=-1)                          # (B, T, G_WIN*C)
    x_pk = jnp.pad(x_pk, ((0, 0), (0, t_pad - T), (0, K_LANES - K_PACK)))
    return x_pk.astype(mxu_dtype).reshape(B * t_pad, K_LANES)


def _pool_matrix(b_blk, t_pad, n_pool, m_out, dtype):
    """Block-diagonal (b_blk*n_pool, m_out) 0/1 matrix: row (b, p) sums the valid conv
    rows [b*t_pad + p*POOL_S, b*t_pad + p*POOL_S + POOL_K) of the merged batch block."""
    q = jnp.arange(b_blk * n_pool)
    qb, qp = q // n_pool, q % n_pool
    col = jnp.arange(m_out)
    cb, ct = col // t_pad, col % t_pad
    start = qp * POOL_S
    mask = ((cb[None, :] == qb[:, None])
            & (ct[None, :] >= start[:, None])
            & (ct[None, :] < start[:, None] + POOL_K))
    return mask.astype(dtype)


def patch_embed_forward(x_bct, params, *, mxu_dtype=jnp.bfloat16):
    """x_bct: (B, C, T) float32, matching the PyTorch 'b eegc t' input."""
    B, C, T = x_bct.shape
    assert C == N_CHANNELS, "channel count must match the module"
    T1 = T - (KW - 1)
    n_pool = (T1 - POOL_K) // POOL_S + 1
    assert n_pool >= 1, "T too small for conv(25) + avgpool(75)"

    t_pad = _round_up(T, 16)            # keep bf16 sublane tiling of the merged rows clean
    b_blk = _pick_batch_block(B, t_pad)
    rows = b_blk * t_pad
    m_out = rows - SHIFT_TAIL           # dropped tail rows are never valid conv outputs

    w_pk, b_fused, wpe, bpe = _fold_and_pack_weights(params, mxu_dtype)
    x_pk = _pack_input(x_bct, t_pad, mxu_dtype)
    pp = _pool_matrix(b_blk, t_pad, n_pool, m_out, mxu_dtype)

    kernel = functools.partial(_patch_embed_kernel, m_out=m_out)

    def _full(arr):
        shp = arr.shape
        return pl.BlockSpec(shp, lambda i, _s=shp: (0,) * len(_s))

    return pl.pallas_call(
        kernel,
        out_shape=jax.ShapeDtypeStruct((B, n_pool, EMB_SIZE), jnp.float32),
        grid=(B // b_blk,),
        in_specs=[pl.BlockSpec((rows, K_LANES), lambda i: (i, 0)),
                  _full(w_pk), _full(b_fused), _full(pp), _full(wpe), _full(bpe)],
        out_specs=pl.BlockSpec((b_blk, n_pool, EMB_SIZE), lambda i: (i, 0, 0)),
        compiler_params=pltpu.CompilerParams(
            dimension_semantics=("parallel",),
            vmem_limit_bytes=32 * 1024 * 1024),
    )(x_pk, w_pk, b_fused, pp, wpe, bpe)


def reference_forward(x_bct, params):
    """Pure-JAX reference mirroring the PyTorch module (inference mode)."""
    w1, b1, w2, b2, gamma, beta, rmean, rvar, wp, bp = params
    B, C, T = x_bct.shape
    NK = N_KERNELS
    y = lax.conv_general_dilated(x_bct[:, None, :, :], w1.reshape(NK, 1, 1, KW),
                                 (1, 1), 'VALID',
                                 dimension_numbers=('NCHW', 'OIHW', 'NCHW'))
    y = y + b1[None, :, None, None]
    y = lax.conv_general_dilated(y, w2.reshape(NK, NK, C, 1), (1, 1), 'VALID',
                                 dimension_numbers=('NCHW', 'OIHW', 'NCHW'))
    y = y + b2[None, :, None, None]
    y = (y - rmean[None, :, None, None]) * lax.rsqrt(rvar + BN_EPS)[None, :, None, None]
    y = y * gamma[None, :, None, None] + beta[None, :, None, None]
    y = jnp.where(y > 0, y, jnp.exp(jnp.minimum(y, 0.0)) - 1.0)
    y = lax.reduce_window(y, 0.0, lax.add, (1, 1, 1, POOL_K),
                          (1, 1, 1, POOL_S), 'VALID') / POOL_K
    z = jnp.einsum('oe,behw->bohw', wp, y) + bp[None, :, None, None]
    Bz, Ez, H, W = z.shape
    return jnp.transpose(z, (0, 2, 3, 1)).reshape(Bz, H * W, Ez)


if __name__ == "__main__":
    key = jax.random.PRNGKey(0)
    ks = jax.random.split(key, 11)
    B, C, T = 2, N_CHANNELS, 144     # small, but satisfies conv(25) + pool(75)
    NK, E = N_KERNELS, EMB_SIZE

    w1 = 0.2 * jax.random.normal(ks[0], (NK, KW), jnp.float32)      # Conv2d(1,40,(1,25)).weight
    b1 = 0.1 * jax.random.normal(ks[1], (NK,), jnp.float32)
    w2 = 0.05 * jax.random.normal(ks[2], (NK, NK, C), jnp.float32)  # Conv2d(40,40,(C,1)).weight
    b2 = 0.1 * jax.random.normal(ks[3], (NK,), jnp.float32)
    gamma = 1.0 + 0.1 * jax.random.normal(ks[4], (NK,), jnp.float32)
    beta = 0.1 * jax.random.normal(ks[5], (NK,), jnp.float32)
    rmean = 0.1 * jax.random.normal(ks[6], (NK,), jnp.float32)
    rvar = 0.5 + jax.random.uniform(ks[7], (NK,), jnp.float32)
    wp = 0.1 * jax.random.normal(ks[8], (E, NK), jnp.float32)       # Conv2d(40,emb,(1,1)).weight
    bp = 0.1 * jax.random.normal(ks[9], (E,), jnp.float32)
    x = jax.random.normal(ks[10], (B, C, T), jnp.float32)

    params = (w1, b1, w2, b2, gamma, beta, rmean, rvar, wp, bp)

    out = jax.block_until_ready(patch_embed_forward(x, params))
    ref = jax.block_until_ready(reference_forward(x, params))

    n_pool = (T - KW + 1 - POOL_K) // POOL_S + 1
    assert out.shape == (B, n_pool, E), out.shape
    max_err = float(jnp.max(jnp.abs(out - ref)))
    # bf16 MXU operands with f32 accumulation -> small rounding vs the f32 reference.
    if max_err > 5e-2:
        raise AssertionError(f"kernel/reference mismatch: max abs err = {max_err}")
    print("KERNEL_OK")
</pallas_src>

<mosaic_0001>
module attributes {stable_mosaic.version = 11 : i64} {
  func.func @_patch_embed_kernel(%arg0: i32, %arg1: memref<144x256xbf16, #tpu.memory_space<vmem>>, %arg2: memref<3x256x40xbf16, #tpu.memory_space<vmem>>, %arg3: memref<1x40xf32, #tpu.memory_space<vmem>>, %arg4: memref<4x128xbf16, #tpu.memory_space<vmem>>, %arg5: memref<40x40xf32, #tpu.memory_space<vmem>>, %arg6: memref<1x40xf32, #tpu.memory_space<vmem>>, %arg7: memref<1x4x40xf32, #tpu.memory_space<vmem>>) attributes {dimension_semantics = [#tpu.dimension_semantics<parallel>], iteration_bounds = array<i64: 2>, scalar_prefetch = 0 : i64, scratch_operands = 0 : i64, tpu.core_type = #tpu.core_type<tc>, window_params = [{transform_indices = @transform_0, window_bounds = array<i64: 144, 256>}, {pipeline_mode = #tpu.pipeline_mode<synchronous>, transform_indices = @transform_1, window_bounds = array<i64: 3, 256, 40>}, {pipeline_mode = #tpu.pipeline_mode<synchronous>, transform_indices = @transform_2, window_bounds = array<i64: 1, 40>}, {pipeline_mode = #tpu.pipeline_mode<synchronous>, transform_indices = @transform_3, window_bounds = array<i64: 4, 128>}, {pipeline_mode = #tpu.pipeline_mode<synchronous>, transform_indices = @transform_4, window_bounds = array<i64: 40, 40>}, {pipeline_mode = #tpu.pipeline_mode<synchronous>, transform_indices = @transform_5, window_bounds = array<i64: 1, 40>}, {transform_indices = @transform_6, window_bounds = array<i64: 1, 4, 40>}]} {
    %c0 = arith.constant 0 : index
    %c0_0 = arith.constant 0 : index
    %0 = vector.load %arg1[%c0, %c0_0] : memref<144x256xbf16, #tpu.memory_space<vmem>>, vector<144x256xbf16>
    %c0_1 = arith.constant 0 : index
    %c0_2 = arith.constant 0 : index
    %c0_3 = arith.constant 0 : index
    %1 = vector.load %arg2[%c0_1, %c0_2, %c0_3] : memref<3x256x40xbf16, #tpu.memory_space<vmem>>, vector<1x256x40xbf16>
    %2 = vector.shape_cast %1 : vector<1x256x40xbf16> to vector<256x40xbf16>
    %cst = arith.constant dense<0.000000e+00> : vector<144x40xf32>
    %3 = tpu.matmul %0, %2, %cst {dimension_numbers = #tpu.dot_dimension_numbers<[1], [0], [0], [1], [0, 0, 1, 1], [], []>} : vector<144x256xbf16>, vector<256x40xbf16>, vector<144x40xf32> -> vector<144x40xf32>
    %c1 = arith.constant 1 : index
    %c0_4 = arith.constant 0 : index
    %c0_5 = arith.constant 0 : index
    %4 = vector.load %arg2[%c1, %c0_4, %c0_5] : memref<3x256x40xbf16, #tpu.memory_space<vmem>>, vector<1x256x40xbf16>
    %5 = vector.shape_cast %4 : vector<1x256x40xbf16> to vector<256x40xbf16>
    %cst_6 = arith.constant dense<0.000000e+00> : vector<144x40xf32>
    %6 = tpu.matmul %0, %5, %cst_6 {dimension_numbers = #tpu.dot_dimension_numbers<[1], [0], [0], [1], [0, 0, 1, 1], [], []>} : vector<144x256xbf16>, vector<256x40xbf16>, vector<144x40xf32> -> vector<144x40xf32>
    %c2 = arith.constant 2 : index
    %c0_7 = arith.constant 0 : index
    %c0_8 = arith.constant 0 : index
    %7 = vector.load %arg2[%c2, %c0_7, %c0_8] : memref<3x256x40xbf16, #tpu.memory_space<vmem>>, vector<1x256x40xbf16>
    %8 = vector.shape_cast %7 : vector<1x256x40xbf16> to vector<256x40xbf16>
    %cst_9 = arith.constant dense<0.000000e+00> : vector<144x40xf32>
    %9 = tpu.matmul %0, %8, %cst_9 {dimension_numbers = #tpu.dot_dimension_numbers<[1], [0], [0], [1], [0, 0, 1, 1], [], []>} : vector<144x256xbf16>, vector<256x40xbf16>, vector<144x40xf32> -> vector<144x40xf32>
    %10 = vector.extract_strided_slice %3 {offsets = [0, 0], sizes = [128, 40], strides = [1, 1]} : vector<144x40xf32> to vector<128x40xf32>
    %11 = vector.extract_strided_slice %6 {offsets = [8, 0], sizes = [128, 40], strides = [1, 1]} : vector<144x40xf32> to vector<128x40xf32>
    %12 = arith.addf %10, %11 : vector<128x40xf32>
    %13 = vector.extract_strided_slice %9 {offsets = [16, 0], sizes = [128, 40], strides = [1, 1]} : vector<144x40xf32> to vector<128x40xf32>
    %14 = arith.addf %12, %13 : vector<128x40xf32>
    %c0_10 = arith.constant 0 : index
    %c0_11 = arith.constant 0 : index
    %15 = vector.load %arg3[%c0_10, %c0_11] : memref<1x40xf32, #tpu.memory_space<vmem>>, vector<1x40xf32>
    %16 = vector.broadcast %15 : vector<1x40xf32> to vector<128x40xf32>
    %17 = arith.addf %14, %16 : vector<128x40xf32>
    %cst_12 = arith.constant 0.000000e+00 : f32
    %18 = vector.broadcast %cst_12 : f32 to vector<128x40xf32>
    %19 = arith.cmpf ogt, %17, %18 : vector<128x40xf32>
    %cst_13 = arith.constant 0.000000e+00 : f32
    %20 = vector.broadcast %cst_13 : f32 to vector<128x40xf32>
    %21 = arith.minimumf %17, %20 : vector<128x40xf32>
    %22 = math.exp %21 : vector<128x40xf32>
    %cst_14 = arith.constant 1.000000e+00 : f32
    %23 = vector.broadcast %cst_14 : f32 to vector<128x40xf32>
    %24 = arith.subf %22, %23 : vector<128x40xf32>
    %25 = arith.select %19, %17, %24 : vector<128x40xi1>, vector<128x40xf32>
    %c0_15 = arith.constant 0 : index
    %c0_16 = arith.constant 0 : index
    %26 = vector.load %arg4[%c0_15, %c0_16] : memref<4x128xbf16, #tpu.memory_space<vmem>>, vector<4x128xbf16>
    %27 = arith.truncf %25 : vector<128x40xf32> to vector<128x40xbf16>
    %cst_17 = arith.constant dense<0.000000e+00> : vector<4x40xf32>
    %28 = tpu.matmul %26, %27, %cst_17 {dimension_numbers = #tpu.dot_dimension_numbers<[1], [0], [0], [1], [0, 0, 1, 1], [], []>} : vector<4x128xbf16>, vector<128x40xbf16>, vector<4x40xf32> -> vector<4x40xf32>
    %c0_18 = arith.constant 0 : index
    %c0_19 = arith.constant 0 : index
    %29 = vector.load %arg5[%c0_18, %c0_19] : memref<40x40xf32, #tpu.memory_space<vmem>>, vector<40x40xf32>
    %cst_20 = arith.constant dense<0.000000e+00> : vector<4x40xf32>
    %30 = tpu.matmul %28, %29, %cst_20 {dimension_numbers = #tpu.dot_dimension_numbers<[1], [0], [0], [1], [0, 0, 1, 1], [], []>} : vector<4x40xf32>, vector<40x40xf32>, vector<4x40xf32> -> vector<4x40xf32>
    %c0_21 = arith.constant 0 : index
    %c0_22 = arith.constant 0 : index
    %31 = vector.load %arg6[%c0_21, %c0_22] : memref<1x40xf32, #tpu.memory_space<vmem>>, vector<1x40xf32>
    %32 = vector.broadcast %31 : vector<1x40xf32> to vector<4x40xf32>
    %33 = arith.addf %30, %32 : vector<4x40xf32>
    %34 = vector.shape_cast %33 : vector<4x40xf32> to vector<1x4x40xf32>
    %c0_23 = arith.constant 0 : index
    %c0_24 = arith.constant 0 : index
    %c0_25 = arith.constant 0 : index
    %35 = vector.load %arg7[%c0_23, %c0_24, %c0_25] : memref<1x4x40xf32, #tpu.memory_space<vmem>>, vector<1x4x40xf32>
    tpu.vector_store %arg7[%c0_23, %c0_24, %c0_25], %34 {strides = array<i32>} : memref<1x4x40xf32, #tpu.memory_space<vmem>>, vector<1x4x40xf32>,
    return
  }
  func.func @transform_0(%arg0: i32) -> (i32, i32) {
    %c0_i32 = arith.constant 0 : i32
    %c0_i32_0 = arith.constant 0 : i32
    return %arg0, %c0_i32 : i32, i32
  }
  func.func @transform_1(%arg0: i32) -> (i32, i32, i32) {
    %c0_i32 = arith.constant 0 : i32
    %c0_i32_0 = arith.constant 0 : i32
    %c0_i32_1 = arith.constant 0 : i32
    %c0_i32_2 = arith.constant 0 : i32
    return %c0_i32, %c0_i32_0, %c0_i32_1 : i32, i32, i32
  }
  func.func @transform_2(%arg0: i32) -> (i32, i32) {
    %c0_i32 = arith.constant 0 : i32
    %c0_i32_0 = arith.constant 0 : i32
    %c0_i32_1 = arith.constant 0 : i32
    return %c0_i32, %c0_i32_0 : i32, i32
  }
  func.func @transform_3(%arg0: i32) -> (i32, i32) {
    %c0_i32 = arith.constant 0 : i32
    %c0_i32_0 = arith.constant 0 : i32
    %c0_i32_1 = arith.constant 0 : i32
    return %c0_i32, %c0_i32_0 : i32, i32
  }
  func.func @transform_4(%arg0: i32) -> (i32, i32) {
    %c0_i32 = arith.constant 0 : i32
    %c0_i32_0 = arith.constant 0 : i32
    %c0_i32_1 = arith.constant 0 : i32
    return %c0_i32, %c0_i32_0 : i32, i32
  }
  func.func @transform_5(%arg0: i32) -> (i32, i32) {
    %c0_i32 = arith.constant 0 : i32
    %c0_i32_0 = arith.constant 0 : i32
    %c0_i32_1 = arith.constant 0 : i32
    return %c0_i32, %c0_i32_0 : i32, i32
  }
  func.func @transform_6(%arg0: i32) -> (i32, i32, i32) {
    %c0_i32 = arith.constant 0 : i32
    %c0_i32_0 = arith.constant 0 : i32
    %c0_i32_1 = arith.constant 0 : i32
    return %arg0, %c0_i32, %c0_i32_0 : i32, i32, i32
  }
}

</mosaic_0001>

<bundles_post_ra>
// kernel: tpu_custom_call.1
= control target key start
LH: loop header
LB: loop body
LE: loop exit
PB: predicated region body
PF: predicated region fallthrough
CT: control target
= control target key end

     0   :  { %11 = vsyncpa [#allocation3], 0  ;;  %s2602_s0 = inlined_call_operand.vmem [shape: bf16[288,256], index: 0, kind: input, shape index: {}]   ;;  %s2603_s1 = inlined_call_operand.vmem [shape: bf16[3,256,40], index: 1, kind: input, shape index: {}]   ;;  %s2604_s2 = inlined_call_operand.vmem [shape: f32[1,40], index: 2, kind: input, shape index: {}]   ;;  %s2605_s3 = inlined_call_operand.vmem [shape: bf16[4,128], index: 3, kind: input, shape index: {}]   ;;  %s2606_s4 = inlined_call_operand.vmem [shape: f32[40,40], index: 4, kind: input, shape index: {}]   ;;  %s2607_s5 = inlined_call_operand.vmem [shape: f32[1,40], index: 5, kind: input, shape index: {}]   ;;  %s2608_s6 = inlined_call_operand.hbm [shape: f32[2,4,40], index: 6, kind: output, shape index: {}]  }
   0x1   :  { %13 = vsyncpa [#allocation3 + $0x1], 0  ;;  %s2113_s21 = smov 0   ;;  %s2115_s22 = smov 0  }
   0x2   :  { %s2117_s23 = smov 0   ;;  %s2119_s24 = smov 0  }
   0x3 LB: > { %s2134_s25 = sadd.s32 4294967295, %s2072_s24   ;;  %s1420_s26 = sadd.s32 4294967294, %s2072_s24   ;;  %s2072_s24 = sphi %s2119_s24, %s2614_s24   ;;  %s2068_s23 = sphi %s2117_s23, %s2613_s23   ;;  %s2064_s22 = sphi %s2115_s22, %s2612_s22   ;;  %s2060_s21 = sphi %s2113_s21, %s2611_s21  }
   0x4   : > { %s2138_s27 = sadd.s32 1, %s2072_s24   ;;  %s157_s28 = sadd.s32 1, %s2068_s23 }
   0x5   : > { %s154_s29 = ssub.s32 %s2072_s24, %s2138_s27  ;;  %p167_p0 = scmp.ne.s32.totalorder %s2068_s23, %s2064_s22 }
   0x6   : > { %p155_p1 = scmp.eq.s32.totalorder %s154_s29, 0  ;;  %p168_p2 = scmp.eq.s32.totalorder %s2134_s25, 1 }
   0x7   : > { %p173_p3 = scmp.ne.s32.totalorder %s2064_s22, %s2060_s21  ;;  %p174_p4 = scmp.eq.s32.totalorder %s1420_s26, 1 }
   0x8   : > { %s2149_s30 = scalar_select %p155_p1, %s2068_s23, %s157_s28  }
   0x9   : > { %p2151_p5 = por %p168_p2, %p167_p0  ;;  %p2155_p6 = por %p174_p4, %p173_p3 }
   0xa   : > { %p1423_p7 = scmp.ge.s32.totalorder %s2072_s24, 1  ;;  %p217_p8 = scmp.lt.s32.totalorder %s2072_s24, 3 }
   0xc   : > { %p218_p9 = pnand %p1423_p7, %p217_p8 }
   0xd   : > { %v1903_v0 = vld [vmem:[%s2603_s1 + $0x40] sm:$0xff] (!%p218_p9)   ;;  %s248_s11 = smul.u32 (!%p218_p9), 18, %s2134_s25  ;;  %v1905_v2 = vld [vmem:[%s2603_s1 + $0x48] sm:$0xff] (!%p218_p9)   ;;  %v1907_v4 = vld [vmem:[%s2603_s1 + $0x50] sm:$0xff] (!%p218_p9)   ;;  %vm2075_vm0 = vmmov (!%p218_p9), 0   ;;  %s1577_s13 = sshll.u32 (!%p218_p9), %s2134_s25, 6 }
   0xe   : > { %221 = sbr.rel (%p218_p9) target bundleno = 834 (0x342), region = 44  ;;  %v1904_v1 = vld [vmem:[%s2603_s1] sm:$0xff] (!%p218_p9)   ;;  %1845 = vmatprep.subr.bf16.mxu1 (!%p218_p9), %v1903_v0  ;;  %1581 = vmatprep.subr.bf16.mxu0 (!%p218_p9), %v1903_v0  ;;  %v1906_v3 = vld [vmem:[%s2603_s1 + $0x8] sm:$0xff] (!%p218_p9)   ;;  %v1908_v5 = vld [vmem:[%s2603_s1 + $0x10] sm:$0xff] (!%p218_p9)   ;;  %s2560_s19 = scalar_lea.hbm (!%p218_p9), %s2608_s6, %s1577_s13 }
   0xf   : > { %p249_p10 = scmp.lt.s32.totalorder (!%p218_p9), %s248_s11, 35  ;;  %1853 = vmatpush3.bf16.msra.mxu1 (!%p218_p9), %v1904_v1  ;;  %1582 = vmatpush3.bf16.msra.mxu0 (!%p218_p9), %v1904_v1  ;;  %v1909_v6 = vld [vmem:[%s2603_s1 + $0x58] sm:$0xff] (!%p218_p9)   ;;  %v1911_v8 = vld [vmem:[%s2603_s1 + $0x60] sm:$0xff] (!%p218_p9)   ;;  %v1913_v10 = vld [vmem:[%s2603_s1 + $0x68] sm:$0xff] (!%p218_p9)   ;;  %s2077_s25 = smov (!%p218_p9), [#allocation2]  }
  0x10   : > { %1846 = vmatprep.subr.bf16.mxu1 (!%p218_p9), %v1905_v2  ;;  %1583 = vmatprep.subr.bf16.mxu0 (!%p218_p9), %v1905_v2  ;;  %v1910_v7 = vld [vmem:[%s2603_s1 + $0x18] sm:$0xff] (!%p218_p9)   ;;  %v1912_v9 = vld [vmem:[%s2603_s1 + $0x20] sm:$0xff] (!%p218_p9)   ;;  %v1914_v13 = vld [vmem:[%s2603_s1 + $0x28] sm:$0xff] (!%p218_p9)   ;;  %v2074_v2 = vmov (!%p218_p9), 0.0   ;;  %s2014_s26 = sshll.u32 (!%p218_p9), %s2077_s25, 4  ;;  %s2015_s26 = int_to_ptr.vmem [resolvable:$false] %s2014_s26 }
  0x11   : > { %v1915_v14 = vld [vmem:[%s2603_s1 + $0x70] sm:$0xff] (!%p218_p9)   ;;  %v1917_v16 = vld [vmem:[%s2603_s1 + $0x78] sm:$0xff] (!%p218_p9)   ;;  %v1925_v18 = vld [vmem:[%s2603_s1 + $0x140] sm:$0xff] (!%p218_p9)   ;;  %s2016_s28 = scalar_lea.vmem (!%p218_p9), %s2015_s26, 128 }
  0x12   : > { %v1916_v15 = vld [vmem:[%s2603_s1 + $0x30] sm:$0xff] (!%p218_p9)   ;;  %v1918_v17 = vld [vmem:[%s2603_s1 + $0x38] sm:$0xff] (!%p218_p9)   ;;  %v1930_v21 = vld [vmem:[%s2603_s1 + $0xc0] sm:$0xff] (!%p218_p9)  }
  0x13   : > { %1854 = vmatpush3.bf16.msra.mxu1 (!%p218_p9), %v1906_v3  ;;  %1584 = vmatpush3.bf16.msra.mxu0 (!%p218_p9), %v1906_v3  ;;  %v1926_v22 = vld [vmem:[%s2603_s1 + $0x100] sm:$0xff] (!%p218_p9)   ;;  %v1931_v24 = vld [vmem:[%s2603_s1 + $0x148] sm:$0xff] (!%p218_p9)   ;;  %v1938_v29 = vld [vmem:[%s2603_s1 + $0x150] sm:$0xff] (!%p218_p9)  }
  0x14   : > { %1847 = vmatprep.subr.bf16.mxu1 (!%p218_p9), %v1907_v4  ;;  %1585 = vmatprep.subr.bf16.mxu0 (!%p218_p9), %v1907_v4  ;;  %v1932_v25 = vld [vmem:[%s2603_s1 + $0x80] sm:$0xff] (!%p218_p9)   ;;  %v1937_v27 = vld [vmem:[%s2603_s1 + $0xc8] sm:$0xff] (!%p218_p9)   ;;  %v1940_v33 = vld [vmem:[%s2603_s1 + $0x110] sm:$0xff] (!%p218_p9)  }
  0x15   : > { %s2616_s11 = smov (!%p249_p10, %s248_s11), 35  ;;  %v1933_v28 = vld [vmem:[%s2603_s1 + $0x108] sm:$0xff]   ;;  %v1944_v35 = vld [vmem:[%s2603_s1 + $0xd0] sm:$0xff]   ;;  %v1945_v36 = vld [vmem:[%s2603_s1 + $0x158] sm:$0xff]  }
  0x16   : > { %s1580_s9 = sshll.u32 %s2616_s11, 3  ;;  %v1939_v32 = vld [vmem:[%s2603_s1 + $0x88] sm:$0xff]   ;;  %v1946_v37 = vld [vmem:[%s2603_s1 + $0x90] sm:$0xff]   ;;  %v1951_v39 = vld [vmem:[%s2603_s1 + $0xd8] sm:$0xff]  }
  0x17   : > { %1855 = vmatpush3.bf16.msra.mxu1 %v1908_v5  ;;  %1586 = vmatpush3.bf16.msra.mxu0 %v1908_v5  ;;  %s2192_s17 = scalar_lea.vmem %s2602_s0, %s1580_s9  ;;  %v1947_v40 = vld [vmem:[%s2603_s1 + $0x118] sm:$0xff]   ;;  %v1952_v41 = vld [vmem:[%s2603_s1 + $0x160] sm:$0xff]   ;;  %v1959_v48 = vld [vmem:[%s2603_s1 + $0x168] sm:$0xff]   ;;  %s245_s9 = sand.u32 1, %s2064_s22  }
  0x18   : > { %1848 = vmatprep.subr.bf16.mxu1 %v1909_v6  ;;  %1587 = vmatprep.subr.bf16.mxu0 %v1909_v6  ;;  %v2201_v11 = vld [vmem:[%s2192_s17 + $0x44] ss:$8 sps:$4 sm:$0xff]   ;;  %v2227_v19 = vld [vmem:[%s2192_s17 + $0x40] ss:$8 sps:$4 sm:$0xff]   ;;  %v2239_v23 = vld [vmem:[%s2192_s17 + $0x54] ss:$8 sps:$4 sm:$0xff]  }
  0x19   : > { %556 = vmatprep.mubr.bf16.mxu1 %v2201_v11  ;;  %v2205_v12 = vld [vmem:[%s2192_s17 + $0x4] ss:$8 sps:$4 sm:$0xff]   ;;  %v2230_v20 = vld [vmem:[%s2192_s17] ss:$8 sps:$4 sm:$0xff]   ;;  %v2248_v26 = vld [vmem:[%s2192_s17 + $0x14] ss:$8 sps:$4 sm:$0xff]  }
  0x1a   : > { %524 = vmatprep.mubr.bf16.mxu0 %v2205_v12  ;;  %v2263_v30 = vld [vmem:[%s2192_s17 + $0x50] ss:$8 sps:$4 sm:$0xff]   ;;  %v2276_v34 = vld [vmem:[%s2192_s17 + $0x64] ss:$8 sps:$4 sm:$0xff]   ;;  %v2303_v42 = vld [vmem:[%s2192_s17 + $0x60] ss:$8 sps:$4 sm:$0xff]  }
  0x1b   : > { %1856 = vmatpush3.bf16.msra.mxu1 %v1910_v7  ;;  %1588 = vmatpush3.bf16.msra.mxu0 %v1910_v7  ;;  %v2266_v31 = vld [vmem:[%s2192_s17 + $0x10] ss:$8 sps:$4 sm:$0xff]   ;;  %v2288_v38 = vld [vmem:[%s2192_s17 + $0x24] ss:$8 sps:$4 sm:$0xff]   ;;  %v1950_v43 = vld [vmem:[%s2192_s17 + $0x20] ss:$8 sps:$4 sm:$0xff]  }
  0x1c   : > { %1849 = vmatprep.subr.bf16.mxu1 %v1911_v8  ;;  %1589 = vmatprep.subr.bf16.mxu0 %v1911_v8  ;;  %v1953_v44 = vld [vmem:[%s2603_s1 + $0x98] sm:$0xff]   ;;  %v1954_v45 = vld [vmem:[%s2603_s1 + $0x120] sm:$0xff]   ;;  %v1965_v51 = vld [vmem:[%s2603_s1 + $0xe8] sm:$0xff]   ;;  %s1348_s11 = scalar_lea.sflag [#allocation3], %s245_s9 }
  0x1d   : > { %v1958_v46 = vld [vmem:[%s2603_s1 + $0xe0] sm:$0xff]   ;;  %v2317_v47 = vld [vmem:[%s2192_s17 + $0x74] ss:$8 sps:$4 sm:$0xff]   ;;  %v1961_v52 = vld [vmem:[%s2603_s1 + $0x128] sm:$0xff]  }
  0x1e   : > { %v1960_v49 = vld [vmem:[%s2603_s1 + $0xa0] sm:$0xff]   ;;  %v1962_v50 = vld [vmem:[%s2192_s17 + $0x34] ss:$8 sps:$4 sm:$0xff]   ;;  %v1957_v54 = vld [vmem:[%s2192_s17 + $0x70] ss:$8 sps:$4 sm:$0xff]  }
  0x1f   : > { %1857 = vmatpush3.bf16.msra.mxu1 %v1912_v9  ;;  %1590 = vmatpush3.bf16.msra.mxu0 %v1912_v9  ;;  %v1966_v53 = vld [vmem:[%s2603_s1 + $0x170] sm:$0xff]   ;;  %v1967_v56 = vld [vmem:[%s2603_s1 + $0xa8] sm:$0xff]   ;;  %v1973_v60 = vld [vmem:[%s2603_s1 + $0x178] sm:$0xff]  }
  0x20   : > { %1850 = vmatprep.subr.bf16.mxu1 %v1913_v10  ;;  %1591 = vmatprep.subr.bf16.mxu0 %v1913_v10  ;;  %v1964_v55 = vld [vmem:[%s2192_s17 + $0x30] ss:$8 sps:$4 sm:$0xff]   ;;  %v1969_v58 = vld [vmem:[%s2192_s17 + $0x84] ss:$8 sps:$4 sm:$0xff]   ;;  %v1971_v1 = vld [vmem:[%s2192_s17 + $0x80] ss:$8 sps:$4 sm:$0xff]  }
  0x21   : > { %v1968_v57 = vld [vmem:[%s2603_s1 + $0x130] sm:$0xff]   ;;  %v1976_v62 = vld [vmem:[%s2603_s1 + $0xf8] sm:$0xff]   ;;  %s1424_s17 = sshll.u32 %s245_s9, 2 }
  0x22   : > { %v1972_v59 = vld [vmem:[%s2603_s1 + $0xf0] sm:$0xff]   ;;  %v1975_v63 = vld [vmem:[%s2603_s1 + $0x138] sm:$0xff]   ;;  %s247_s14 = scalar_lea.vmem [#allocation2], %s1424_s17 }
  0x23   : > { %1858 = vmatpush3.bf16.msra.mxu1 %v1914_v13  ;;  %1592 = vmatpush3.bf16.msra.mxu0 %v1914_v13  ;;  %v1974_v61 = vld [vmem:[%s2603_s1 + $0xb0] sm:$0xff]   ;;  %v1977_v0 = vld [vmem:[%s2603_s1 + $0xb8] sm:$0xff]   ;;  %s1361_s15 = sshll.u32 %s247_s14, 4  ;;  %s2562_s15 = int_to_ptr.vmem [resolvable:$true] %s1361_s15 }
  0x24   : > { %1851 = vmatprep.subr.bf16.mxu1 %v1915_v14  ;;  %1593 = vmatprep.subr.bf16.mxu0 %v1915_v14  ;;  %s2010_s20 = scalar_lea.vmem %s2562_s15, 64  ;;  %p2017_p0 = scmp.lt.s32.totalorder %s2562_s15, %s2015_s26 }
  0x25   : > { %p2011_p11 = scmp.ne.s32.totalorder %s2562_s15, %s2010_s20  ;;  %p2018_p1 = scmp.lt.s32.totalorder %s2016_s28, %s2010_s20 }
  0x27   : > { %1859 = vmatpush3.bf16.msra.mxu1 %v1916_v15  ;;  %1594 = vmatpush3.bf16.msra.mxu0 %v1916_v15  ;;  %p2012_p12 = pnand %p2011_p11, %p2151_p5  ;;  %p2019_p2 = por %p2018_p1, %p2017_p0 }
  0x28   : > { %1852 = vmatprep.subr.bf16.mxu1 %v1917_v16  ;;  %1595 = vmatprep.subr.bf16.mxu0 %v1917_v16 }
  0x29   : > { %p2013_p13 = pneg %p2012_p12 }
  0x2b   : > { %1860 = vmatpush3.bf16.msra.mxu1 %v1918_v17  ;;  %1596 = vmatpush3.bf16.msra.mxu0 %v1918_v17  ;;  %p2020_p3 = pnand %p2019_p2, %p2013_p13 }
  0x2c   : > { %1721 = vmatprep.subr.bf16.mxu0 %v1925_v18  ;;  %1651 = vmatprep.subr.bf16.mxu1 %v1930_v21  ;;  %v1261_v21 = vld [vmem:[%s2606_s4 + $0x10] sm:$0xff] }
  0x2e   : > { %557 = vmatmul.mubr.bf16.vlgmr.msra.gmra.mrb[0].mxu1 %v2227_v19  ;;  %525 = vmatmul.mubr.bf16.vlgmr.msra.gmra.mrb[0].mxu0 %v2230_v20 }
  0x2f   : > { %1722 = vmatpush3.bf16.msra.mxu0 %v1926_v22  ;;  %564 = vmatprep.mubr.bf16.mxu1 %v2239_v23 }
  0x30   : > { %1723 = vmatprep.subr.bf16.mxu0 %v1931_v24  ;;  %1652 = vmatpush3.bf16.msra.mxu1 %v1932_v25 }
  0x31   : > { %532 = vmatprep.mubr.bf16.mxu0 %v2248_v26  ;;  %1653 = vmatprep.subr.bf16.mxu1 %v1937_v27 }
  0x33   : > { %1724 = vmatpush3.bf16.msra.mxu0 %v1933_v28  ;;  %v1262_v28 = vld [vmem:[%s2606_s4 + $0x18] sm:$0xff] }
  0x34   : > { %1725 = vmatprep.subr.bf16.mxu0 %v1938_v29  ;;  %1654 = vmatpush3.bf16.msra.mxu1 %v1939_v32 }
  0x35   : > { %1655 = vmatprep.subr.bf16.mxu1 %v1944_v35 }
  0x36   : > { %565 = vmatmul.mubr.bf16.gmra.mrb[4].mxu1 %v2263_v30  ;;  %533 = vmatmul.mubr.bf16.gmra.mrb[4].mxu0 %v2266_v31 }
  0x37   : > { %1726 = vmatpush3.bf16.msra.mxu0 %v1940_v33  ;;  %572 = vmatprep.mubr.bf16.mxu1 %v2276_v34  ;;  %v1843_v33 = vpack.c.bf16 %v1262_v28, %v1261_v21 }
  0x38   : > { %1727 = vmatprep.subr.bf16.mxu0 %v1945_v36  ;;  %1656 = vmatpush3.bf16.msra.mxu1 %v1946_v37 }
  0x39   : > { %540 = vmatprep.mubr.bf16.mxu0 %v2288_v38  ;;  %1657 = vmatprep.subr.bf16.mxu1 %v1951_v39 }
  0x3b   : > { %1728 = vmatpush3.bf16.msra.mxu0 %v1947_v40 }
  0x3c   : > { %1729 = vmatprep.subr.bf16.mxu0 %v1952_v41  ;;  %1658 = vmatpush3.bf16.msra.mxu1 %v1953_v44 }
  0x3d   : > { %1659 = vmatprep.subr.bf16.mxu1 %v1958_v46 }
  0x3e   : > { %573 = vmatmul.mubr.bf16.gmra.mrb[8].mxu1 %v2303_v42  ;;  %541 = vmatmul.mubr.bf16.gmra.mrb[8].mxu0 %v1950_v43 }
  0x3f   : > { %1730 = vmatpush3.bf16.msra.mxu0 %v1954_v45  ;;  %580 = vmatprep.mubr.bf16.mxu1 %v2317_v47 }
  0x40   : > { %1731 = vmatprep.subr.bf16.mxu0 %v1959_v48  ;;  %1660 = vmatpush3.bf16.msra.mxu1 %v1960_v49 }
  0x41   : > { %548 = vmatprep.mubr.bf16.mxu0 %v1962_v50  ;;  %1661 = vmatprep.subr.bf16.mxu1 %v1965_v51 }
  0x43   : > { %1732 = vmatpush3.bf16.msra.mxu0 %v1961_v52 }
  0x44   : > { %1733 = vmatprep.subr.bf16.mxu0 %v1966_v53  ;;  %1662 = vmatpush3.bf16.msra.mxu1 %v1967_v56 }
  0x45   : > { %1663 = vmatprep.subr.bf16.mxu1 %v1972_v59 }
  0x46   : > { %581 = vmatmul.mubr.bf16.gmra.mrb[12].mxu1 %v1957_v54  ;;  %549 = vmatmul.mubr.bf16.gmra.mrb[12].mxu0 %v1964_v55 }
  0x47   : > { %1734 = vmatpush3.bf16.msra.mxu0 %v1968_v57  ;;  %588 = vmatprep.mubr.bf16.mxu1 %v1969_v58 }
  0x48   : > { %1735 = vmatprep.subr.bf16.mxu0 %v1973_v60  ;;  %1664 = vmatpush3.bf16.msra.mxu1 %v1974_v61 }
  0x49   : > { %988 = vmatprep.mubr.bf16.mxu0 %v2205_v12  ;;  %1665 = vmatprep.subr.bf16.mxu1 %v1976_v62 }
  0x4b   : > { %1736 = vmatpush3.bf16.msra.mxu0 %v1975_v63 }
  0x4c   : > { %1666 = vmatpush3.bf16.msra.mxu1 %v1977_v0  ;;  %1806 = vmatprep.subr.bf16.mxu0 %v2074_v2 }
  0x4e   : > { %589 = vmatmul.mubr.bf16.gmra.mrb[16].mxu1 %v1971_v1  ;;  %989 = vmatmul.mubr.bf16.vlgmr.msra.gmra.mrb[16].mxu0 %v2230_v20 }
  0x4f   : > { %756 = vmatprep.mubr.bf16.mxu1 %v2205_v12  ;;  %994 = vmatprep.mubr.bf16.mxu0 %v2248_v26 }
  0x56   : > { %757 = vmatmul.mubr.bf16.vlgmr.msra.gmra.mrb[20].mxu1 %v2230_v20  ;;  %995 = vmatmul.mubr.bf16.gmra.mrb[20].mxu0 %v2266_v31  ;;  %v1260_v20 = vld [vmem:[%s2606_s4 + $0x8] sm:$0xff] }
  0x57   : > { %763 = vmatprep.mubr.bf16.mxu1 %v2248_v26  ;;  %1002 = vmatprep.mubr.bf16.mxu0 %v2288_v38  ;;  %v2076_v26 = vmov 0.0|0.0  }
  0x58   : > { %1839 = vmatprep.subr.bf16.mxu1 %v2076_v26 }
  0x5e   : > { %764 = vmatmul.mubr.bf16.gmra.mrb[24].mxu1 %v2266_v31  ;;  %1003 = vmatmul.mubr.bf16.gmra.mrb[24].mxu0 %v1950_v43 }
  0x5f   : > { %771 = vmatprep.mubr.bf16.mxu1 %v2288_v38  ;;  %1010 = vmatprep.mubr.bf16.mxu0 %v1962_v50  ;;  %v1263_v38 = vld [vmem:[%s2606_s4 + $0x20] sm:$0xff] }
  0x66   : > { %772 = vmatmul.mubr.bf16.gmra.mrb[28].mxu1 %v1950_v43  ;;  %1011 = vmatmul.mubr.bf16.gmra.mrb[28].mxu0 %v1964_v55 }
  0x67   : > { %779 = vmatprep.mubr.bf16.mxu1 %v1962_v50  ;;  %1018 = vmatprep.mubr.bf16.mxu0 %v2201_v11 }
  0x6e   : > { %780 = vmatmul.mubr.bf16.gmra.mrb[32].mxu1 %v1964_v55  ;;  %1019 = vmatmul.mubr.bf16.gmra.mrb[32].mxu0 %v2227_v19 }
  0x6f   : > { %787 = vmatprep.mubr.bf16.mxu1 %v2201_v11  ;;  %1026 = vmatprep.mubr.bf16.mxu0 %v2239_v23 }
  0x76   : > { %788 = vmatmul.mubr.bf16.gmra.mrb[36].mxu1 %v2227_v19  ;;  %1027 = vmatmul.mubr.bf16.gmra.mrb[36].mxu0 %v2263_v30  ;;  %v1259_v19 = vld [vmem:[%s2606_s4] sm:$0xff] }
  0x77   : > { %795 = vmatprep.mubr.bf16.mxu1 %v2239_v23  ;;  %1034 = vmatprep.mubr.bf16.mxu0 %v2276_v34  ;;  %v1840_v27 = vpack.c.bf16 %v1260_v20, %v1259_v19  ;;  %v2444_v20 = vld [vmem:[%s2604_s2] ss:$0 sm:$0xff] }
  0x79   : > { %1841 = vmatpush3.bf16.msra.mxu1 %v1840_v27 }
  0x7a   : > { %1842 = vmatprep.subr.bf16.mxu1 %v2076_v26 }
  0x7d   : > { %1844 = vmatpush3.bf16.msra.mxu1 %v1843_v33 }
  0x7e   : > { %796 = vmatmul.mubr.bf16.gmra.mrb[40].mxu1 %v2263_v30  ;;  %1035 = vmatmul.mubr.bf16.gmra.mrb[40].mxu0 %v2303_v42 }
  0x7f   : > { %803 = vmatprep.mubr.bf16.mxu1 %v2276_v34  ;;  %1042 = vmatprep.mubr.bf16.mxu0 %v2317_v47 }
  0x80   : > { %1834 = vmatprep.subr.mxu1 %v2074_v2 }
  0x81   : > { %1835 = vmatpush3.msra.mxu1 %v1263_v38 }
  0x86   : > { %804 = vmatmul.mubr.bf16.gmra.mrb[44].mxu1 %v2303_v42  ;;  %1043 = vmatmul.mubr.bf16.gmra.mrb[44].mxu0 %v1957_v54 }
  0x87   : > { %811 = vmatprep.mubr.bf16.mxu1 %v2317_v47  ;;  %1050 = vmatprep.mubr.bf16.mxu0 %v1969_v58 }
  0x8e   : > { %812 = vmatmul.mubr.bf16.gmra.mrb[48].mxu1 %v1957_v54  ;;  %1051 = vmatmul.mubr.bf16.gmra.mrb[48].mxu0 %v1971_v1 }
  0x8f   : > { %819 = vmatprep.mubr.bf16.mxu1 %v1969_v58  ;;  %1822 = vmatprep.mubr.msk.bf16.mxu0 %vm2075_vm0, %v2074_v2 }
  0x96   : > { %820 = vmatmul.mubr.bf16.gmra.mrb[52].mxu1 %v1971_v1 }
  0x97   : > { %1836 = vmatprep.mubr.msk.f32.mxu1 %vm2075_vm0, %v2074_v2 }
 0x101   : > { %v1621_v3 = vpop.f32.mrb[0].mxu1  ;;  %v1597_v4 = vpop.f32.mrb[0].mxu0 }
 0x102   : > { %v1622_v5 = vpop.f32.mrb[1].mxu1  ;;  %v1598_v6 = vpop.f32.mrb[1].mxu0 }
 0x103   : > { %v2390_v7 = vadd.f32 %v1622_v5, %v1621_v3  ;;  %v1624_v8 = vpop.f32.mrb[2].mxu1  ;;  %v2392_v9 = vadd.f32 %v1598_v6, %v1597_v4  ;;  %v1600_v10 = vpop.f32.mrb[2].mxu0 }
 0x104   : > { %v1625_v11 = vpop.f32.mrb[3].mxu1  ;;  %v1601_v12 = vpop.f32.mrb[3].mxu0 }
 0x105   : > { %v2394_v13 = vadd.f32 %v1625_v11, %v1624_v8  ;;  %v2396_v14 = vadd.f32 %v1601_v12, %v1600_v10 }
 0x109   : > { %v1627_v15 = vpop.f32.mrb[4].mxu1  ;;  %v1603_v16 = vpop.f32.mrb[4].mxu0 }
 0x10a   : > { %v1628_v17 = vpop.f32.mrb[5].mxu1  ;;  %v1604_v18 = vpop.f32.mrb[5].mxu0 }
 0x10b   : > { %v2409_v22 = vadd.f32 %v1628_v17, %v1627_v15  ;;  %v1630_v23 = vpop.f32.mrb[6].mxu1  ;;  %v2411_v24 = vadd.f32 %v1604_v18, %v1603_v16  ;;  %v1606_v25 = vpop.f32.mrb[6].mxu0 }
 0x10c   : > { %v1631_v29 = vpop.f32.mrb[7].mxu1  ;;  %v1607_v30 = vpop.f32.mrb[7].mxu0 }
 0x10d   : > { %v2416_v31 = vadd.f32 %v1631_v29, %v1630_v23  ;;  %v2418_v32 = vadd.f32 %v1607_v30, %v1606_v25 }
 0x111   : > { %v1633_v34 = vpop.f32.mrb[8].mxu1  ;;  %v1609_v35 = vpop.f32.mrb[8].mxu0 }
 0x112   : > { %v1634_v36 = vpop.f32.mrb[9].mxu1  ;;  %v1610_v37 = vpop.f32.mrb[9].mxu0 }
 0x113   : > { %v2424_v39 = vadd.f32 %v1634_v36, %v1633_v34  ;;  %v1636_v40 = vpop.f32.mrb[10].mxu1  ;;  %v2426_v41 = vadd.f32 %v1610_v37, %v1609_v35  ;;  %v1612_v42 = vpop.f32.mrb[10].mxu0 }
 0x114   : > { %v1637_v43 = vpop.f32.mrb[11].mxu1  ;;  %v1613_v44 = vpop.f32.mrb[11].mxu0 }
 0x115   : > { %v2428_v45 = vadd.f32 %v1637_v43, %v1636_v40  ;;  %v2430_v46 = vadd.f32 %v1613_v44, %v1612_v42 }
 0x119   : > { %v1639_v47 = vpop.f32.mrb[12].mxu1  ;;  %v1615_v48 = vpop.f32.mrb[12].mxu0 }
 0x11a   : > { %v1640_v49 = vpop.f32.mrb[13].mxu1  ;;  %v1616_v50 = vpop.f32.mrb[13].mxu0 }
 0x11b   : > { %v2432_v51 = vadd.f32 %v1640_v49, %v1639_v47  ;;  %v1642_v52 = vpop.f32.mrb[14].mxu1  ;;  %v2434_v53 = vadd.f32 %v1616_v50, %v1615_v48  ;;  %v1618_v54 = vpop.f32.mrb[14].mxu0 }
 0x11c   : > { %v1643_v55 = vpop.f32.mrb[15].mxu1  ;;  %v1619_v56 = vpop.f32.mrb[15].mxu0 }
 0x11d   : > { %v2436_v57 = vadd.f32 %v1643_v55, %v1642_v52  ;;  %v2438_v58 = vadd.f32 %v1619_v56, %v1618_v54 }
 0x121   : > { %v1645_v59 = vpop.f32.mrb[16].mxu1  ;;  %v1737_v60 = vpop.f32.mrb[16].mxu0 }
 0x122   : > { %v1646_v61 = vpop.f32.mrb[17].mxu1  ;;  %v1738_v62 = vpop.f32.mrb[17].mxu0 }
 0x123   : > { %v1648_v63 = vpop.f32.mrb[18].mxu1  ;;  %v1740_v0 = vpop.f32.mrb[18].mxu0 }
 0x124   : > { %v1649_v1 = vpop.f32.mrb[19].mxu1  ;;  %v1741_v3 = vpop.f32.mrb[19].mxu0 }
 0x129   : > { %v1667_v4 = vpop.f32.mrb[20].mxu1  ;;  %v1743_v5 = vpop.f32.mrb[20].mxu0 }
 0x12a   : > { %v1668_v6 = vpop.f32.mrb[21].mxu1  ;;  %v1744_v8 = vpop.f32.mrb[21].mxu0 }
 0x12b   : > { %v1670_v10 = vpop.f32.mrb[22].mxu1  ;;  %v1745_v11 = vadd.f32 %v1744_v8, %v1743_v5  ;;  %v1746_v12 = vpop.f32.mrb[22].mxu0 }
 0x12c   : > { %v1671_v15 = vpop.f32.mrb[23].mxu1  ;;  %v1747_v16 = vpop.f32.mrb[23].mxu0 }
 0x12d   : > { %v1672_v17 = vadd.f32 %v1671_v15, %v1670_v10  ;;  %v1748_v18 = vadd.f32 %v1747_v16, %v1746_v12 }
 0x12f   : > { %v1059_v19 = vadd.f32 %v1672_v17, %v2392_v9 }
 0x131   : > { %v1075_v21 = vadd.f32 %v1745_v11, %v1059_v19  ;;  %v1673_v23 = vpop.f32.mrb[24].mxu1  ;;  %v1749_v25 = vpop.f32.mrb[24].mxu0 }
 0x132   : > { %v1674_v26 = vpop.f32.mrb[25].mxu1  ;;  %v1750_v27 = vpop.f32.mrb[25].mxu0 }
 0x133   : > { %v2447_v28 = vadd.f32 %v2444_v20, %v1075_v21  ;;  %v1675_v29 = vadd.f32 %v1674_v26, %v1673_v23  ;;  %v1676_v30 = vpop.f32.mrb[26].mxu1  ;;  %v1751_v33 = vadd.f32 %v1750_v27, %v1749_v25  ;;  %v1752_v34 = vpop.f32.mrb[26].mxu0 }
 0x134   : > { %v1677_v35 = vpop.f32.mrb[27].mxu1  ;;  %v1753_v36 = vpop.f32.mrb[27].mxu0 }
 0x135   : > { %v1130_v9 = vmin.f32 %v2447_v28, 0.0  ;;  %v1060_v37 = vadd.f32 %v1675_v29, %v2396_v14  ;;  %v1678_v38 = vadd.f32 %v1677_v35, %v1676_v30  ;;  %v1754_v40 = vadd.f32 %v1753_v36, %v1752_v34 }
 0x136   : > { %vm1114_vm2 = vcmp.gt.f32.partialorder %v2447_v28, 0.0 }
 0x137   : > { %v1076_v42 = vadd.f32 %v1748_v18, %v1060_v37  ;;  %v1061_v43 = vadd.f32 %v1678_v38, %v2411_v24  ;;  %v1146_v44 = vmul.f32 1.442695, %v1130_v9 }
 0x139   : > { %v2453_v47 = vadd.f32 %v2444_v20, %v1076_v42  ;;  %v1077_v48 = vadd.f32 %v1751_v33, %v1061_v43  ;;  %v1679_v49 = vpop.f32.mrb[28].mxu1  ;;  %v1755_v50 = vpop.f32.mrb[28].mxu0  ;;  %1978 = vpow2.f32 %v1146_v44 }
 0x13a   : > { %v1680_v52 = vpop.f32.mrb[29].mxu1  ;;  %v1756_v54 = vpop.f32.mrb[29].mxu0 }
 0x13b   : > { %v1131_v55 = vmin.f32 %v2453_v47, 0.0  ;;  %v2457_v56 = vadd.f32 %v2444_v20, %v1077_v48  ;;  %v1681_v14 = vadd.f32 %v1680_v52, %v1679_v49  ;;  %v1682_v59 = vpop.f32.mrb[30].mxu1  ;;  %v1757_v60 = vadd.f32 %v1756_v54, %v1755_v50  ;;  %v1758_v61 = vpop.f32.mrb[30].mxu0 }
 0x13c   : > { %v1683_v24 = vpop.f32.mrb[31].mxu1  ;;  %v1759_v62 = vpop.f32.mrb[31].mxu0  ;;  %vm1115_vm1 = vcmp.gt.f32.partialorder %v2453_v47, 0.0 }
 0x13d   : > { %v1148_v63 = vmul.f32 1.442695, %v1131_v55  ;;  %v1132_v0 = vmin.f32 %v2457_v56, 0.0  ;;  %v1062_v1 = vadd.f32 %v1681_v14, %v2418_v32  ;;  %v1684_v3 = vadd.f32 %v1683_v24, %v1682_v59 }
 0x13e   : > { %v1760_v4 = vadd.f32 %v1759_v62, %v1758_v61  ;;  %vm1116_vm4 = vcmp.gt.f32.partialorder %v2457_v56, 0.0 }
 0x13f   : > { %1980 = vpow2.f32 %v1148_v63  ;;  %v1078_v5 = vadd.f32 %v1754_v40, %v1062_v1  ;;  %v1150_v6 = vmul.f32 1.442695, %v1132_v0  ;;  %v1063_v8 = vadd.f32 %v1684_v3, %v2426_v41 }
 0x141   : > { %v2463_v10 = vadd.f32 %v2444_v20, %v1078_v5  ;;  %v1685_v11 = vpop.f32.mrb[32].mxu1  ;;  %v1761_v12 = vpop.f32.mrb[32].mxu0  ;;  %v1079_v15 = vadd.f32 %v1757_v60, %v1063_v8  ;;  %1982 = vpow2.f32 %v1150_v6 }
 0x142   : > { %v1686_v16 = vpop.f32.mrb[33].mxu1  ;;  %v1762_v17 = vpop.f32.mrb[33].mxu0 }
 0x143   : > { %v1133_v18 = vmin.f32 %v2463_v10, 0.0  ;;  %v1687_v19 = vadd.f32 %v1686_v16, %v1685_v11  ;;  %v1688_v21 = vpop.f32.mrb[34].mxu1  ;;  %v1763_v32 = vadd.f32 %v1762_v17, %v1761_v12  ;;  %v1764_v23 = vpop.f32.mrb[34].mxu0  ;;  %v2467_v25 = vadd.f32 %v2444_v20, %v1079_v15 }
 0x144   : > { %v1689_v26 = vpop.f32.mrb[35].mxu1  ;;  %v1765_v41 = vpop.f32.mrb[35].mxu0  ;;  %vm1117_vm3 = vcmp.gt.f32.partialorder %v2463_v10, 0.0 }
 0x145   : > { %v1152_v27 = vmul.f32 1.442695, %v1133_v18  ;;  %v1064_v29 = vadd.f32 %v1687_v19, %v2430_v46  ;;  %v1690_v30 = vadd.f32 %v1689_v26, %v1688_v21  ;;  %v1766_v33 = vadd.f32 %v1765_v41, %v1764_v23  ;;  %v1979_v34 = vpop.eup %1978 }
 0x146   : > { %v1134_v35 = vmin.f32 %v2467_v25, 0.0  ;;  %v1558_v40 = vadd.f32 -1.0, %v1979_v34  ;;  %vm1118_vm6 = vcmp.gt.f32.partialorder %v2467_v25, 0.0 }
 0x147   : > { %1984 = vpow2.f32 %v1152_v27  ;;  %v1080_v36 = vadd.f32 %v1760_v4, %v1064_v29  ;;  %v1065_v9 = vadd.f32 %v1690_v30, %v2434_v53 }
 0x148   : > { %v1154_v37 = vmul.f32 1.442695, %v1134_v35  ;;  %v1194_v1 = vsel %vm1114_vm2, %v2447_v28, %v1558_v40  ;;  %vm1345_vm2 = vcmask 322560  }
 0x149   : > { %v1981_v38 = vpop.eup %1980  ;;  %v2473_v42 = vadd.f32 %v2444_v20, %v1080_v36  ;;  %v1081_v43 = vadd.f32 %v1763_v32, %v1065_v9  ;;  %v1691_v44 = vpop.f32.mrb[36].mxu1 }
 0x14a   : > { %v1767_v48 = vpop.f32.mrb[36].mxu0  ;;  %v1692_v49 = vpop.f32.mrb[37].mxu1  ;;  %v1559_v50 = vadd.f32 -1.0, %v1981_v38  ;;  %1986 = vpow2.f32 %v1154_v37 }
 0x14b   : > { %v1768_v46 = vpop.f32.mrb[37].mxu0  ;;  %v1135_v52 = vmin.f32 %v2473_v42, 0.0  ;;  %v2477_v54 = vadd.f32 %v2444_v20, %v1081_v43  ;;  %v1693_v55 = vadd.f32 %v1692_v49, %v1691_v44  ;;  %v1694_v14 = vpop.f32.mrb[38].mxu1  ;;  %vm1119_vm5 = vcmp.gt.f32.partialorder %v2473_v42, 0.0 }
 0x14c   : > { %v1770_v53 = vpop.f32.mrb[38].mxu0  ;;  %v1695_v59 = vpop.f32.mrb[39].mxu1  ;;  %v1769_v60 = vadd.f32 %v1768_v46, %v1767_v48  ;;  %v1195_v61 = vsel %vm1115_vm1, %v2453_v47, %v1559_v50  ;;  %vm1271_vm1 = vcmask 326656  }
 0x14d   : > { %v1771_v24 = vpop.f32.mrb[39].mxu0  ;;  %v1156_v62 = vmul.f32 1.442695, %v1135_v52  ;;  %v1136_v63 = vmin.f32 %v2477_v54, 0.0  ;;  %v1066_v0 = vadd.f32 %v1693_v55, %v2438_v58  ;;  %v1983_v3 = vpop.eup %1982  ;;  %v1696_v4 = vadd.f32 %v1695_v59, %v1694_v14 }
 0x14e   : > { %v1211_v5 = vpack.c.bf16 %v1195_v61, %v1194_v1  ;;  %v1772_v6 = vadd.f32 %v1771_v24, %v1770_v53  ;;  %v1560_v47 = vadd.f32 -1.0, %v1983_v3  ;;  %vm1120_vm8 = vcmp.gt.f32.partialorder %v2477_v54, 0.0 }
 0x14f   : > { %1988 = vpow2.f32 %v1156_v62  ;;  %v1082_v8 = vadd.f32 %v1766_v33, %v1066_v0  ;;  %v1158_v11 = vmul.f32 1.442695, %v1136_v63  ;;  %v1067_v12 = vadd.f32 %v1696_v4, %v2390_v7 }
 0x150   : > { %1807 = vmatpush3.bf16.msra.mxu0 %v1211_v5  ;;  %v1196_v9 = vsel %vm1116_vm4, %v2457_v56, %v1560_v47 }
 0x151   : > { %v1985_v15 = vpop.eup %1984  ;;  %v2487_v16 = vadd.f32 %v2444_v20, %v1082_v8  ;;  %v1697_v17 = vpop.f32.mrb[40].mxu1  ;;  %1808 = vmatprep.subr.bf16.mxu0 %v2074_v2  ;;  %v1083_v28 = vadd.f32 %v1769_v60, %v1067_v12  ;;  %1990 = vpow2.f32 %v1158_v11 }
 0x152   : > { %v1773_v18 = vpop.f32.mrb[40].mxu0  ;;  %v1561_v58 = vadd.f32 -1.0, %v1985_v15  ;;  %v1698_v19 = vpop.f32.mrb[41].mxu1 }
 0x153   : > { %v1774_v21 = vpop.f32.mrb[41].mxu0  ;;  %v1137_v32 = vmin.f32 %v2487_v16, 0.0  ;;  %v1699_v23 = vadd.f32 %v1698_v19, %v1697_v17  ;;  %v1700_v7 = vpop.f32.mrb[42].mxu1  ;;  %v2494_v27 = vadd.f32 %v2444_v20, %v1083_v28  ;;  %vm1121_vm7 = vcmp.gt.f32.partialorder %v2487_v16, 0.0 }
 0x154   : > { %v1775_v26 = vadd.f32 %v1774_v21, %v1773_v18  ;;  %v1776_v41 = vpop.f32.mrb[42].mxu0  ;;  %v1701_v29 = vpop.f32.mrb[43].mxu1  ;;  %v1197_v30 = vsel %vm1117_vm3, %v2463_v10, %v1561_v58 }
 0x155   : > { %v1777_v33 = vpop.f32.mrb[43].mxu0  ;;  %v1160_v34 = vmul.f32 1.442695, %v1137_v32  ;;  %v1068_v35 = vadd.f32 %v1699_v23, %v2394_v13  ;;  %v1702_v36 = vadd.f32 %v1701_v29, %v1700_v7  ;;  %v1987_v37 = vpop.eup %1986  ;;  %v1138_v38 = vmin.f32 %v2494_v27, 0.0 }
 0x156   : > { %v1212_v40 = vpack.c.bf16 %v1197_v30, %v1196_v9  ;;  %v1778_v43 = vadd.f32 %v1777_v33, %v1776_v41  ;;  %v1562_v10 = vadd.f32 -1.0, %v1987_v37  ;;  %vm1122_vm10 = vcmp.gt.f32.partialorder %v2494_v27, 0.0 }
 0x157   : > { %1992 = vpow2.f32 %v1160_v34  ;;  %v1069_v44 = vadd.f32 %v1702_v36, %v2409_v22  ;;  %v1084_v48 = vadd.f32 %v1772_v6, %v1068_v35  ;;  %v1162_v49 = vmul.f32 1.442695, %v1138_v38 }
 0x158   : > { %1809 = vmatpush3.bf16.msra.mxu0 %v1212_v40  ;;  %v1198_v6 = vsel %vm1118_vm6, %v2467_v25, %v1562_v10 }
 0x159   : > { %v1989_v46 = vpop.eup %1988  ;;  %v2502_v50 = vadd.f32 %v2444_v20, %v1084_v48  ;;  %v1085_v13 = vadd.f32 %v1775_v26, %v1069_v44  ;;  %v1703_v52 = vpop.f32.mrb[44].mxu1  ;;  %1810 = vmatprep.subr.bf16.mxu0 %v2074_v2  ;;  %1994 = vpow2.f32 %v1162_v49 }
 0x15a   : > { %v1779_v55 = vpop.f32.mrb[44].mxu0  ;;  %v1563_v56 = vadd.f32 -1.0, %v1989_v46  ;;  %v1704_v14 = vpop.f32.mrb[45].mxu1 }
 0x15b   : > { %v1780_v53 = vpop.f32.mrb[45].mxu0  ;;  %v1139_v22 = vmin.f32 %v2502_v50, 0.0  ;;  %v2508_v59 = vadd.f32 %v2444_v20, %v1085_v13  ;;  %v1705_v60 = vadd.f32 %v1704_v14, %v1703_v52  ;;  %v1706_v61 = vpop.f32.mrb[46].mxu1  ;;  %vm1123_vm9 = vcmp.gt.f32.partialorder %v2502_v50, 0.0 }
 0x15c   : > { %v1782_v24 = vpop.f32.mrb[46].mxu0  ;;  %v1707_v62 = vpop.f32.mrb[47].mxu1  ;;  %v1781_v63 = vadd.f32 %v1780_v53, %v1779_v55  ;;  %v1199_v0 = vsel %vm1119_vm5, %v2473_v42, %v1563_v56 }
 0x15d   : > { %v1783_v1 = vpop.f32.mrb[47].mxu0  ;;  %v1164_v3 = vmul.f32 1.442695, %v1139_v22  ;;  %v1140_v4 = vmin.f32 %v2508_v59, 0.0  ;;  %v1070_v5 = vadd.f32 %v1705_v60, %v2416_v31  ;;  %v1991_v8 = vpop.eup %1990  ;;  %v1708_v11 = vadd.f32 %v1707_v62, %v1706_v61 }
 0x15e   : > { %v1213_v12 = vpack.c.bf16 %v1199_v0, %v1198_v6  ;;  %v1784_v15 = vadd.f32 %v1783_v1, %v1782_v24  ;;  %v1564_v42 = vadd.f32 -1.0, %v1991_v8  ;;  %vm1124_vm11 = vcmp.gt.f32.partialorder %v2508_v59, 0.0 }
 0x15f   : > { %1996 = vpow2.f32 %v1164_v3  ;;  %v1166_v47 = vmul.f32 1.442695, %v1140_v4  ;;  %v1086_v17 = vadd.f32 %v1778_v43, %v1070_v5  ;;  %v1071_v18 = vadd.f32 %v1708_v11, %v2424_v39 }
 0x160   : > { %1811 = vmatpush3.bf16.msra.mxu0 %v1213_v12  ;;  %v1200_v38 = vsel %vm1120_vm8, %v2477_v54, %v1564_v42 }
 0x161   : > { %v1993_v58 = vpop.eup %1992  ;;  %v2517_v28 = vadd.f32 %v2444_v20, %v1086_v17  ;;  %v1709_v19 = vpop.f32.mrb[48].mxu1  ;;  %1812 = vmatprep.subr.bf16.mxu0 %v2074_v2  ;;  %v1087_v25 = vadd.f32 %v1781_v63, %v1071_v18  ;;  %1998 = vpow2.f32 %v1166_v47 }
 0x162   : > { %v1785_v21 = vpop.f32.mrb[48].mxu0  ;;  %v1565_v31 = vadd.f32 -1.0, %v1993_v58  ;;  %v1710_v32 = vpop.f32.mrb[49].mxu1 }
 0x163   : > { %v1786_v23 = vpop.f32.mrb[49].mxu0  ;;  %v1141_v7 = vmin.f32 %v2517_v28, 0.0  ;;  %v1711_v39 = vadd.f32 %v1710_v32, %v1709_v19  ;;  %v1712_v26 = vpop.f32.mrb[50].mxu1  ;;  %v2524_v30 = vadd.f32 %v2444_v20, %v1087_v25  ;;  %vm1125_vm12 = vcmp.gt.f32.partialorder %v2517_v28, 0.0 }
 0x164   : > { %v1787_v41 = vadd.f32 %v1786_v23, %v1785_v21  ;;  %v1788_v29 = vpop.f32.mrb[50].mxu0  ;;  %v1713_v33 = vpop.f32.mrb[51].mxu1  ;;  %v1201_v34 = vsel %vm1121_vm7, %v2487_v16, %v1565_v31 }
 0x165   : > { %v1789_v35 = vpop.f32.mrb[51].mxu0  ;;  %v1168_v36 = vmul.f32 1.442695, %v1141_v7  ;;  %v1072_v9 = vadd.f32 %v1711_v39, %v2428_v45  ;;  %v1714_v37 = vadd.f32 %v1713_v33, %v1712_v26  ;;  %v1995_v40 = vpop.eup %1994  ;;  %v1142_v43 = vmin.f32 %v2524_v30, 0.0  ;;  %v1210_v39 = vld [vmem:[%s2605_s3] sm:$0x3] }
 0x166   : > { %v1214_v44 = vpack.c.bf16 %v1201_v34, %v1200_v38  ;;  %v1790_v48 = vadd.f32 %v1789_v35, %v1788_v29  ;;  %v1566_v16 = vadd.f32 -1.0, %v1995_v40  ;;  %vm1126_vm13 = vcmp.gt.f32.partialorder %v2524_v30, 0.0 }
 0x167   : > { %2000 = vpow2.f32 %v1168_v36  ;;  %v1073_v49 = vadd.f32 %v1714_v37, %v2432_v51  ;;  %v1088_v46 = vadd.f32 %v1784_v15, %v1072_v9  ;;  %v1170_v10 = vmul.f32 1.442695, %v1142_v43 }
 0x168   : > { %1813 = vmatpush3.bf16.msra.mxu0 %v1214_v44  ;;  %v1202_v1 = vsel %vm1122_vm10, %v2494_v27, %v1566_v16 }
 0x169   : > { %v1997_v13 = vpop.eup %1996  ;;  %v1111_v52 = vadd.f32 %v2444_v20, %v1088_v46  ;;  %v1089_v55 = vadd.f32 %v1787_v41, %v1073_v49  ;;  %v1715_v45 = vpop.f32.mrb[52].mxu1  ;;  %1814 = vmatprep.subr.bf16.mxu0 %v2074_v2  ;;  %2002 = vpow2.f32 %v1170_v10 }
 0x16a   : > { %v1567_v54 = vadd.f32 -1.0, %v1997_v13  ;;  %v1716_v56 = vpop.f32.mrb[53].mxu1 }
 0x16b   : > { %v1143_v14 = vmin.f32 %v1111_v52, 0.0  ;;  %v1112_v53 = vadd.f32 %v2444_v20, %v1089_v55  ;;  %v1717_v51 = vadd.f32 %v1716_v56, %v1715_v45  ;;  %v1718_v22 = vpop.f32.mrb[54].mxu1  ;;  %v1999_v24 = vpop.eup %1998  ;;  %vm1127_vm14 = vcmp.gt.f32.partialorder %v1111_v52, 0.0 }
 0x16c   : > { %v1203_v60 = vsel %vm1123_vm9, %v2502_v50, %v1567_v54  ;;  %v1719_v61 = vpop.f32.mrb[55].mxu1  ;;  %v1568_v6 = vadd.f32 -1.0, %v1999_v24 }
 0x16d   : > { %v1172_v62 = vmul.f32 1.442695, %v1143_v14  ;;  %v1144_v63 = vmin.f32 %v1112_v53, 0.0  ;;  %v1074_v0 = vadd.f32 %v1717_v51, %v2436_v57  ;;  %v1215_v3 = vpack.c.bf16 %v1203_v60, %v1202_v1 }
 0x16e   : > { %v1204_v27 = vsel %vm1124_vm11, %v2508_v59, %v1568_v6  ;;  %vm1128_vm15 = vcmp.gt.f32.partialorder %v1112_v53, 0.0 }
 0x16f   : > { %2004 = vpow2.f32 %v1172_v62  ;;  %v1174_v4 = vmul.f32 1.442695, %v1144_v63  ;;  %v1090_v5 = vadd.f32 %v1790_v48, %v1074_v0  ;;  %1815 = vmatpush3.bf16.msra.mxu0 %v1215_v3 }
 0x170   : > { %1816 = vmatprep.subr.bf16.mxu0 %v2074_v2 }
 0x171   : > { %v2001_v8 = vpop.eup %2000  ;;  %v1113_v11 = vadd.f32 %v2444_v20, %v1090_v5  ;;  %2006 = vpow2.f32 %v1174_v4 }
 0x172   : > { %v1569_v50 = vadd.f32 -1.0, %v2001_v8 }
 0x173   : > { %v1145_v57 = vmin.f32 %v1113_v11, 0.0  ;;  %v2003_v15 = vpop.eup %2002  ;;  %vm1129_vm0 = vcmp.gt.f32.partialorder %v1113_v11, 0.0 }
 0x174   : > { %v1205_v12 = vsel %vm1125_vm12, %v2517_v28, %v1569_v50  ;;  %v1570_v18 = vadd.f32 -1.0, %v2003_v15 }
 0x175   : > { %v1176_v47 = vmul.f32 1.442695, %v1145_v57  ;;  %v1216_v17 = vpack.c.bf16 %v1205_v12, %v1204_v27 }
 0x176   : > { %v1206_v42 = vsel %vm1126_vm13, %v2524_v30, %v1570_v18  ;;  %v1574_v30 = vld [vmem:[%s2607_s5] ss:$0 sm:$0xff] }
 0x177   : > { %2008 = vpow2.f32 %v1176_v47  ;;  %1817 = vmatpush3.bf16.msra.mxu0 %v1216_v17 }
 0x178   : > { %1818 = vmatprep.subr.bf16.mxu0 %v2074_v2 }
 0x179   : > { %v2005_v20 = vpop.eup %2004 }
 0x17a   : > { %v1571_v58 = vadd.f32 -1.0, %v2005_v20 }
 0x17b   : > { %v2007_v21 = vpop.eup %2006 }
 0x17c   : > { %v1207_v19 = vsel %vm1127_vm14, %v1111_v52, %v1571_v58  ;;  %v1572_v28 = vadd.f32 -1.0, %v2007_v21 }
 0x17d   : > { %v1217_v59 = vpack.c.bf16 %v1207_v19, %v1206_v42 }
 0x17e   : > { %v1208_v32 = vsel %vm1128_vm15, %v1112_v53, %v1572_v28 }
 0x17f   : > { %1819 = vmatpush3.bf16.msra.mxu0 %v1217_v59 }
 0x180   : > { %1820 = vmatprep.subr.bf16.mxu0 %v2074_v2 }
 0x181   : > { %v2009_v31 = vpop.eup %2008 }
 0x182   : > { %v1573_v25 = vadd.f32 -1.0, %v2009_v31 }
 0x184   : > { %v1209_v23 = vsel %vm1129_vm0, %v1113_v11, %v1573_v25 }
 0x185   : > { %v1218_v7 = vpack.c.bf16 %v1209_v23, %v1208_v32 }
 0x187   : > { %1821 = vmatpush3.bf16.msra.mxu0 %v1218_v7 }
 0x18a   : > { %1823 = vmatmul.mubr.bf16.vlgmr.msra.gmra.mrb[52].mxu0 %v1210_v39 }
 0x25d   : > { %v1253_v26 = vpop.f32.mrb[52].mxu0 }
 0x25e   : > { %v1824_v41 = vpop.f32.mrb[53].mxu0  ;;  %1837 = vmatmul.mubr.msk.f32.vlgmr.msra.gmra.mrb[56].mxu1 %vm1271_vm1, %v1253_v26 }
 0x25f   : > { %v1256_v2 = vpop.f32.mrb[54].mxu0 }
 0x260   : > { %v1825_v29 = vpop.f32.mrb[55].mxu0 }
 0x331   : > { %v1341_v33 = vpop.f32.mrb[56].mxu1 }
 0x332   : > { %v1342_v34 = vadd.f32 %v1574_v30, %v1341_v33  ;;  %v1838_v35 = vpop.f32.mrb[57].mxu1 }
 0x334   : > { %1346 = vst.msk [vmem:[%s247_s14] sm:$0xf] %vm1345_vm2, %v1342_v34 }
 0x335   : > { %2023 = shalt.err (!%p2020_p3)
}
 0x336   : > { %s2024_s29 = scalar_lea.hbm %s2560_s19, 64  ;;  %s2028_s10 = scalar_lea.hbm %s2608_s6, 128 }
 0x337   : > { %p2025_p4 = scmp.ne.s32.totalorder %s2560_s19, %s2024_s29  ;;  %p2029_p9 = scmp.lt.u32.totalorder %s2560_s19, %s2608_s6 }
 0x338   : > { %p2030_p10 = scmp.lt.u32.totalorder %s2028_s10, %s2024_s29  ;;  %p2032_p12 = scmp.lt.u32.totalorder %s2024_s29, %s2560_s19 }
 0x339   : > { %p2026_p7 = pnand %p2025_p4, %p2151_p5 }
 0x33a   : > { %p2031_p11 = por %p2030_p10, %p2029_p9 }
 0x33b   : > { %p2027_p8 = pneg %p2026_p7 }
 0x33c   : > { %p2033_p13 = por %p2032_p12, %p2031_p11 }
 0x33e   : > { %p2034_p0 = pnand %p2033_p13, %p2027_p8 }
 0x340   : > { %2037 = shalt.err (!%p2034_p0)
}
 0x341   : > { %1861 = dma.vmem_to_hbm [thread:$0]  (%p2151_p5), %s2562_s15, 64, %s2560_s19, %s1348_s11  }
 0x342 PF: > { %p1867_p1 = scmp.ge.s32.totalorder %s2072_s24, 2  ;;  %s1373_s14 = sand.u32 1, %s2060_s21  }
 0x343   : > { %s1374_s16 = scalar_lea.sflag [#allocation3], %s1373_s14 }
 0x344   : > { %p1864_p2 = pnand %p1867_p1, %p2155_p6 }
 0x346   : > { %2055 = dma.done.wait (!%p1864_p2), %s1374_s16, 64  }
 0x347   : > { %2057 = vsyncadd (!%p1864_p2), %s1374_s16, 4294967232  ;;  %p16_p3 = scmp.ge.s32.totalorder %s2138_s27, 4   ;;  %s2611_s21 = smov %s2064_s22 }
 0x348   : > { %s2612_s22 = smov %s2068_s23  ;;  %s2613_s23 = smov %s2149_s30 }
 0x349   : > { %s2614_s24 = smov %s2138_s27  ;;  %18 = sbr.rel (!%p16_p3) target bundleno = 3 (0x3), region = 81 }
 0x350   :  { %1379 = vsyncpa [#allocation3], 1 }
 0x351   :  { %1381 = vsyncpa [#allocation3 + $0x1], 1 }

</bundles_post_ra>
